<compile_context>
chip_gen: v7x
topology: tpu7x:2x2x1
jax: 0.10.0
libtpu: 0.0.40
codegen_flags: <defaults>
</compile_context>

<pallas_src>
import jax
import jax.numpy as jnp
import numpy as np  # noqa: F401  (kept for users who want numpy quantiles)
from jax import lax
from jax.experimental import pallas as pl
from jax.experimental.pallas import tpu as pltpu


def _round_up(x, m):
    return (x + m - 1) // m * m


def _make_kernel(num_q, lanes, tile_rows, steps, n_valid_rows):
    """Builds the kernel body; every size here is a static Python int."""

    def kernel(preds_ref, target_ref, sum_d_ref, sum_r_ref, e_ref):
        c = pl.program_id(0)          # batch chunk      ("parallel" axis)
        s = pl.program_id(1)          # step within chunk ("arbitrary" axis)

        @pl.when(s == 0)
        def _init():
            sum_d_ref[...] = jnp.zeros_like(sum_d_ref)
            sum_r_ref[...] = jnp.zeros_like(sum_r_ref)
            # One-hot lane-expansion matrix: E[i, l] = 1 iff l // num_q == i.
            src = lax.broadcasted_iota(jnp.int32, (128, lanes), 0)
            lane = lax.broadcasted_iota(jnp.int32, (128, lanes), 1)
            sel = (lane >= src * num_q) & (lane < src * num_q + num_q)
            e_ref[...] = jnp.where(sel, 1.0, 0.0).astype(jnp.bfloat16)

        p = preds_ref[...].astype(jnp.float32)     # (tile_rows, lanes)
        t = target_ref[...].astype(jnp.float32)    # (tile_rows, 128)

        # Repeat each target value num_q times along lanes on the idle MXU.
        # Exact: t is split into three bf16 pieces (t == hi + md + lo), each
        # bf16 x {0,1} matmul with f32 accumulation is exact, and their sum
        # reconstructs t bit-for-bit.
        e_mat = e_ref[...]
        t_hi = t.astype(jnp.bfloat16)
        rem1 = t - t_hi.astype(jnp.float32)
        t_md = rem1.astype(jnp.bfloat16)
        t_lo = (rem1 - t_md.astype(jnp.float32)).astype(jnp.bfloat16)
        t_exp = jnp.dot(t_hi, e_mat, preferred_element_type=jnp.float32)
        t_exp = t_exp + jnp.dot(t_md, e_mat, preferred_element_type=jnp.float32)
        t_exp = t_exp + jnp.dot(t_lo, e_mat, preferred_element_type=jnp.float32)

        # Pinball loss with the per-lane quantile weighting deferred to the
        # wrapper epilogue:   loss = q*(t - p) + relu(p - t),   d := p - t.
        d = p - t_exp
        r = jnp.maximum(d, 0.0)

        def _accumulate(dd, rr):
            sum_d_ref[...] += jnp.sum(dd.reshape(-1, 8, lanes), axis=0)
            sum_r_ref[...] += jnp.sum(rr.reshape(-1, 8, lanes), axis=0)

        row0 = (c * steps + s) * tile_rows

        @pl.when(row0 + tile_rows <= n_valid_rows)
        def _full_block():
            _accumulate(d, r)

        @pl.when(row0 + tile_rows > n_valid_rows)
        def _ragged_block():   # partial last block + clamped grid overshoot
            rows = row0 + lax.broadcasted_iota(jnp.int32, (tile_rows, 1), 0)
            keep = rows < n_valid_rows
            _accumulate(jnp.where(keep, d, 0.0), jnp.where(keep, r, 0.0))

    return kernel


def quantile_loss(preds, target, quantiles, *, tile_rows=2048, num_chunks=None):
    """preds: (B, Q), target: (B,), quantiles: list of Q floats -> scalar f32.

    Matches torch.mean(torch.sum(cat([max((q-1)e, qe)]), dim=1)).
    num_chunks=2 occupies both TensorCores on v7x; defaults to 1 elsewhere.
    """
    batch, num_q = preds.shape
    assert target.shape == (batch,)
    assert len(quantiles) == num_q
    lanes = num_q * 128

    if num_chunks is None:
        num_chunks = 1
        try:  # occupy both TensorCores on dual-core parts (v7x), else 1.
            num_chunks = max(1, min(2, int(getattr(jax.devices()[0], "num_cores", 1))))
        except Exception:
            num_chunks = 1

    # Pad only as far as the copy-free interleaved view needs: B % 128 == 0
    # for the (B//128, Q*128) reshape and (B//128) % 8 == 0 for sublane-aligned
    # blocks.  B % 1024 == 0 hits the zero-copy path; padded entries have
    # preds == target == 0 and contribute exactly 0 to the loss.
    b_pad = _round_up(batch, 128)
    if (b_pad // 128) % 8 != 0:
        b_pad = _round_up(batch, 1024)
    if b_pad != batch:
        preds = jnp.pad(preds, ((0, b_pad - batch), (0, 0)))
        target = jnp.pad(target, (0, b_pad - batch))
    n_rows = b_pad // 128

    preds_i = preds.reshape(n_rows, lanes)      # free, contiguous view
    target_i = target.reshape(n_rows, 128)

    tile_rows = min(tile_rows, n_rows)
    tile_rows = max(8, (tile_rows // 8) * 8)
    n_blocks = -(-n_rows // tile_rows)
    num_chunks = max(1, min(num_chunks, n_blocks))
    steps = -(-n_blocks // num_chunks)
    last_block = n_blocks - 1

    def _in_index(c, s):
        # Clamp so grid overshoot (num_chunks not dividing n_blocks) re-fetches
        # the last valid block; the kernel masks its contribution to zero.
        return (jnp.minimum(c * steps + s, last_block), 0)

    bytes_per_row = lanes * preds_i.dtype.itemsize + 128 * target_i.dtype.itemsize
    vmem_limit = int(min(64 * 1024 * 1024,
                         max(32 * 1024 * 1024,
                             3 * tile_rows * bytes_per_row + 8 * 1024 * 1024)))

    kernel = _make_kernel(num_q, lanes, tile_rows, steps, n_rows)

    sum_d, sum_r = pl.pallas_call(
        kernel,
        out_shape=(
            jax.ShapeDtypeStruct((num_chunks * 8, lanes), jnp.float32),
            jax.ShapeDtypeStruct((num_chunks * 8, lanes), jnp.float32),
        ),
        grid_spec=pltpu.PrefetchScalarGridSpec(
            num_scalar_prefetch=0,
            grid=(num_chunks, steps),
            in_specs=[
                pl.BlockSpec((tile_rows, lanes), _in_index),   # preds (interleaved)
                pl.BlockSpec((tile_rows, 128), _in_index),     # target
            ],
            out_specs=(
                pl.BlockSpec((8, lanes), lambda c, s: (c, 0)),
                pl.BlockSpec((8, lanes), lambda c, s: (c, 0)),
            ),
            scratch_shapes=[pltpu.VMEM((128, lanes), jnp.bfloat16)],
        ),
        compiler_params=pltpu.CompilerParams(
            dimension_semantics=("parallel", "arbitrary"),
            vmem_limit_bytes=vmem_limit,
        ),
    )(preds_i, target_i)

    # Tiny epilogue in plain XLA (a few KiB): fold in the per-lane quantile
    # weights.   sum q*(t-p) = -sum_l q_lane[l] * colsum(sum_d)[l]
    #            sum relu(p-t) = sum(sum_r)
    q_lane = jnp.tile(jnp.asarray(quantiles, dtype=jnp.float32), 128)  # (lanes,)
    total = jnp.sum(sum_r) - jnp.dot(jnp.sum(sum_d, axis=0), q_lane)
    return total / batch


def quantile_loss_ref(preds, target, quantiles):
    """Pure-JAX reference matching the PyTorch module exactly."""
    losses = []
    for i, q in enumerate(quantiles):
        errors = target - preds[:, i]
        losses.append(jnp.maximum((q - 1.0) * errors, q * errors)[:, None])
    return jnp.mean(jnp.sum(jnp.concatenate(losses, axis=1), axis=1))


if __name__ == "__main__":
    key = jax.random.PRNGKey(0)
    quantiles = [0.1, 0.5, 0.9]
    nq = len(quantiles)

    cases = [
        dict(batch=8, kwargs={}),                                    # tiny, single block
        dict(batch=300, kwargs={}),                                  # pad path, single block
        dict(batch=2500, kwargs=dict(tile_rows=8, num_chunks=2)),    # multi-step grid, ragged
                                                                     # tail mask, clamped
                                                                     # overshoot, 2 chunks
    ]
    for case in cases:
        b = case["batch"]
        key, k1, k2 = jax.random.split(key, 3)
        preds = jax.random.normal(k1, (b, nq), dtype=jnp.float32)
        target = jax.random.normal(k2, (b,), dtype=jnp.float32)
        out = jax.block_until_ready(
            quantile_loss(preds, target, quantiles, **case["kwargs"])
        )
        ref = quantile_loss_ref(preds, target, quantiles)
        assert jnp.allclose(out, ref, rtol=1e-5, atol=1e-6), (b, out, ref)

    print("KERNEL_OK")
</pallas_src>

<mosaic_0001>
module attributes {stable_mosaic.version = 11 : i64} {
  func.func @kernel(%arg0: i32, %arg1: i32, %arg2: memref<8x384xf32, #tpu.memory_space<vmem>>, %arg3: memref<8x128xf32, #tpu.memory_space<vmem>>, %arg4: memref<8x384xf32, #tpu.memory_space<vmem>>, %arg5: memref<8x384xf32, #tpu.memory_space<vmem>>, %arg6: memref<128x384xbf16, #tpu.memory_space<vmem>>) attributes {dimension_semantics = [#tpu.dimension_semantics<parallel>, #tpu.dimension_semantics<arbitrary>], iteration_bounds = array<i64: 1, 1>, scalar_prefetch = 0 : i64, scratch_operands = 1 : i64, tpu.core_type = #tpu.core_type<tc>, window_params = [{transform_indices = @transform_0, window_bounds = array<i64: 8, 384>}, {transform_indices = @transform_1, window_bounds = array<i64: 8, 128>}, {transform_indices = @transform_2, window_bounds = array<i64: 8, 384>}, {transform_indices = @transform_3, window_bounds = array<i64: 8, 384>}]} {
    %c0_i32 = arith.constant 0 : i32
    %0 = arith.cmpi eq, %arg1, %c0_i32 : i32
    %1 = arith.extui %0 : i1 to i32
    %c0_i32_0 = arith.constant 0 : i32
    %2 = arith.cmpi ne, %1, %c0_i32_0 : i32
    scf.if %2 {
      %cst_15 = arith.constant 0.000000e+00 : f32
      %32 = vector.broadcast %cst_15 : f32 to vector<8x384xf32>
      %c0_16 = arith.constant 0 : index
      %c0_17 = arith.constant 0 : index
      %33 = vector.load %arg4[%c0_16, %c0_17] : memref<8x384xf32, #tpu.memory_space<vmem>>, vector<8x384xf32>
      tpu.vector_store %arg4[%c0_16, %c0_17], %32 {strides = array<i32>} : memref<8x384xf32, #tpu.memory_space<vmem>>, vector<8x384xf32>,
      %cst_18 = arith.constant 0.000000e+00 : f32
      %34 = vector.broadcast %cst_18 : f32 to vector<8x384xf32>
      %c0_19 = arith.constant 0 : index
      %c0_20 = arith.constant 0 : index
      %35 = vector.load %arg5[%c0_19, %c0_20] : memref<8x384xf32, #tpu.memory_space<vmem>>, vector<8x384xf32>
      tpu.vector_store %arg5[%c0_19, %c0_20], %34 {strides = array<i32>} : memref<8x384xf32, #tpu.memory_space<vmem>>, vector<8x384xf32>,
      %36 = tpu.iota {dimensions = array<i32: 0>} : vector<128x384xi32>
      %37 = tpu.iota {dimensions = array<i32: 1>} : vector<128x384xi32>
      %c3_i32 = arith.constant 3 : i32
      %38 = vector.broadcast %c3_i32 : i32 to vector<128x384xi32>
      %39 = arith.muli %36, %38 : vector<128x384xi32>
      %40 = arith.cmpi sge, %37, %39 : vector<128x384xi32>
      %c3_i32_21 = arith.constant 3 : i32
      %41 = vector.broadcast %c3_i32_21 : i32 to vector<128x384xi32>
      %42 = arith.muli %36, %41 : vector<128x384xi32>
      %c3_i32_22 = arith.constant 3 : i32
      %43 = vector.broadcast %c3_i32_22 : i32 to vector<128x384xi32>
      %44 = arith.addi %42, %43 : vector<128x384xi32>
      %45 = arith.cmpi slt, %37, %44 : vector<128x384xi32>
      %46 = arith.andi %40, %45 : vector<128x384xi1>
      %cst_23 = arith.constant 1.000000e+00 : f32
      %cst_24 = arith.constant 0.000000e+00 : f32
      %47 = vector.broadcast %cst_23 : f32 to vector<128x384xf32>
      %48 = vector.broadcast %cst_24 : f32 to vector<128x384xf32>
      %49 = arith.select %46, %47, %48 : vector<128x384xi1>, vector<128x384xf32>
      %50 = arith.truncf %49 : vector<128x384xf32> to vector<128x384xbf16>
      %c0_25 = arith.constant 0 : index
      %c0_26 = arith.constant 0 : index
      %51 = vector.load %arg6[%c0_25, %c0_26] : memref<128x384xbf16, #tpu.memory_space<vmem>>, vector<128x384xbf16>
      tpu.vector_store %arg6[%c0_25, %c0_26], %50 {strides = array<i32>} : memref<128x384xbf16, #tpu.memory_space<vmem>>, vector<128x384xbf16>,
    } else {
    }
    %c0 = arith.constant 0 : index
    %c0_1 = arith.constant 0 : index
    %3 = vector.load %arg2[%c0, %c0_1] : memref<8x384xf32, #tpu.memory_space<vmem>>, vector<8x384xf32>
    %c0_2 = arith.constant 0 : index
    %c0_3 = arith.constant 0 : index
    %4 = vector.load %arg3[%c0_2, %c0_3] : memref<8x128xf32, #tpu.memory_space<vmem>>, vector<8x128xf32>
    %c0_4 = arith.constant 0 : index
    %c0_5 = arith.constant 0 : index
    %5 = vector.load %arg6[%c0_4, %c0_5] : memref<128x384xbf16, #tpu.memory_space<vmem>>, vector<128x384xbf16>
    %6 = arith.truncf %4 : vector<8x128xf32> to vector<8x128xbf16>
    %7 = arith.extf %6 : vector<8x128xbf16> to vector<8x128xf32>
    %8 = arith.subf %4, %7 : vector<8x128xf32>
    %9 = arith.truncf %8 : vector<8x128xf32> to vector<8x128xbf16>
    %10 = arith.extf %9 : vector<8x128xbf16> to vector<8x128xf32>
    %11 = arith.subf %8, %10 : vector<8x128xf32>
    %12 = arith.truncf %11 : vector<8x128xf32> to vector<8x128xbf16>
    %cst = arith.constant dense<0.000000e+00> : vector<8x384xf32>
    %13 = tpu.matmul %6, %5, %cst {dimension_numbers = #tpu.dot_dimension_numbers<[1], [0], [0], [1], [0, 0, 1, 1], [], []>} : vector<8x128xbf16>, vector<128x384xbf16>, vector<8x384xf32> -> vector<8x384xf32>
    %cst_6 = arith.constant dense<0.000000e+00> : vector<8x384xf32>
    %14 = tpu.matmul %9, %5, %cst_6 {dimension_numbers = #tpu.dot_dimension_numbers<[1], [0], [0], [1], [0, 0, 1, 1], [], []>} : vector<8x128xbf16>, vector<128x384xbf16>, vector<8x384xf32> -> vector<8x384xf32>
    %15 = arith.addf %13, %14 : vector<8x384xf32>
    %cst_7 = arith.constant dense<0.000000e+00> : vector<8x384xf32>
    %16 = tpu.matmul %12, %5, %cst_7 {dimension_numbers = #tpu.dot_dimension_numbers<[1], [0], [0], [1], [0, 0, 1, 1], [], []>} : vector<8x128xbf16>, vector<128x384xbf16>, vector<8x384xf32> -> vector<8x384xf32>
    %17 = arith.addf %15, %16 : vector<8x384xf32>
    %18 = arith.subf %3, %17 : vector<8x384xf32>
    %cst_8 = arith.constant 0.000000e+00 : f32
    %19 = vector.broadcast %cst_8 : f32 to vector<8x384xf32>
    %20 = arith.maximumf %18, %19 : vector<8x384xf32>
    %c1_i32 = arith.constant 1 : i32
    %21 = arith.muli %arg0, %c1_i32 : i32
    %22 = arith.addi %21, %arg1 : i32
    %c8_i32 = arith.constant 8 : i32
    %23 = arith.muli %22, %c8_i32 : i32
    %c8_i32_9 = arith.constant 8 : i32
    %24 = arith.addi %23, %c8_i32_9 : i32
    %c8_i32_10 = arith.constant 8 : i32
    %25 = arith.cmpi sle, %24, %c8_i32_10 : i32
    %26 = arith.extui %25 : i1 to i32
    %c0_i32_11 = arith.constant 0 : i32
    %27 = arith.cmpi ne, %26, %c0_i32_11 : i32
    scf.if %27 {
      %c0_15 = arith.constant 0 : index
      %c0_16 = arith.constant 0 : index
      %32 = vector.load %arg4[%c0_15, %c0_16] : memref<8x384xf32, #tpu.memory_space<vmem>>, vector<8x384xf32>
      %33 = vector.shape_cast %18 : vector<8x384xf32> to vector<1x8x384xf32>
      %cst_17 = arith.constant dense<0.000000e+00> : vector<8x384xf32>
      %34 = vector.multi_reduction <add>, %33, %cst_17 [0] : vector<1x8x384xf32> to vector<8x384xf32>
      %35 = arith.addf %32, %34 : vector<8x384xf32>
      %c0_18 = arith.constant 0 : index
      %c0_19 = arith.constant 0 : index
      %36 = vector.load %arg4[%c0_18, %c0_19] : memref<8x384xf32, #tpu.memory_space<vmem>>, vector<8x384xf32>
      tpu.vector_store %arg4[%c0_18, %c0_19], %35 {strides = array<i32>} : memref<8x384xf32, #tpu.memory_space<vmem>>, vector<8x384xf32>,
      %c0_20 = arith.constant 0 : index
      %c0_21 = arith.constant 0 : index
      %37 = vector.load %arg5[%c0_20, %c0_21] : memref<8x384xf32, #tpu.memory_space<vmem>>, vector<8x384xf32>
      %38 = vector.shape_cast %20 : vector<8x384xf32> to vector<1x8x384xf32>
      %cst_22 = arith.constant dense<0.000000e+00> : vector<8x384xf32>
      %39 = vector.multi_reduction <add>, %38, %cst_22 [0] : vector<1x8x384xf32> to vector<8x384xf32>
      %40 = arith.addf %37, %39 : vector<8x384xf32>
      %c0_23 = arith.constant 0 : index
      %c0_24 = arith.constant 0 : index
      %41 = vector.load %arg5[%c0_23, %c0_24] : memref<8x384xf32, #tpu.memory_space<vmem>>, vector<8x384xf32>
      tpu.vector_store %arg5[%c0_23, %c0_24], %40 {strides = array<i32>} : memref<8x384xf32, #tpu.memory_space<vmem>>, vector<8x384xf32>,
    } else {
    }
    %c8_i32_12 = arith.constant 8 : i32
    %28 = arith.addi %23, %c8_i32_12 : i32
    %c8_i32_13 = arith.constant 8 : i32
    %29 = arith.cmpi sgt, %28, %c8_i32_13 : i32
    %30 = arith.extui %29 : i1 to i32
    %c0_i32_14 = arith.constant 0 : i32
    %31 = arith.cmpi ne, %30, %c0_i32_14 : i32
    scf.if %31 {
      %32 = tpu.iota {dimensions = array<i32: 0>} : vector<8x1xi32>
      %33 = vector.broadcast %23 : i32 to vector<8x1xi32>
      %34 = arith.addi %33, %32 : vector<8x1xi32>
      %c8_i32_15 = arith.constant 8 : i32
      %35 = vector.broadcast %c8_i32_15 : i32 to vector<8x1xi32>
      %36 = arith.cmpi slt, %34, %35 : vector<8x1xi32>
      %cst_16 = arith.constant 0.000000e+00 : f32
      %37 = vector.shape_cast %36 : vector<8x1xi1> to vector<8x1xi1>
      %38 = vector.broadcast %37 : vector<8x1xi1> to vector<8x384xi1>
      %39 = vector.broadcast %cst_16 : f32 to vector<8x384xf32>
      %40 = arith.select %38, %18, %39 : vector<8x384xi1>, vector<8x384xf32>
      %cst_17 = arith.constant 0.000000e+00 : f32
      %41 = vector.shape_cast %36 : vector<8x1xi1> to vector<8x1xi1>
      %42 = vector.broadcast %41 : vector<8x1xi1> to vector<8x384xi1>
      %43 = vector.broadcast %cst_17 : f32 to vector<8x384xf32>
      %44 = arith.select %42, %20, %43 : vector<8x384xi1>, vector<8x384xf32>
      %c0_18 = arith.constant 0 : index
      %c0_19 = arith.constant 0 : index
      %45 = vector.load %arg4[%c0_18, %c0_19] : memref<8x384xf32, #tpu.memory_space<vmem>>, vector<8x384xf32>
      %46 = vector.shape_cast %40 : vector<8x384xf32> to vector<1x8x384xf32>
      %cst_20 = arith.constant dense<0.000000e+00> : vector<8x384xf32>
      %47 = vector.multi_reduction <add>, %46, %cst_20 [0] : vector<1x8x384xf32> to vector<8x384xf32>
      %48 = arith.addf %45, %47 : vector<8x384xf32>
      %c0_21 = arith.constant 0 : index
      %c0_22 = arith.constant 0 : index
      %49 = vector.load %arg4[%c0_21, %c0_22] : memref<8x384xf32, #tpu.memory_space<vmem>>, vector<8x384xf32>
      tpu.vector_store %arg4[%c0_21, %c0_22], %48 {strides = array<i32>} : memref<8x384xf32, #tpu.memory_space<vmem>>, vector<8x384xf32>,
      %c0_23 = arith.constant 0 : index
      %c0_24 = arith.constant 0 : index
      %50 = vector.load %arg5[%c0_23, %c0_24] : memref<8x384xf32, #tpu.memory_space<vmem>>, vector<8x384xf32>
      %51 = vector.shape_cast %44 : vector<8x384xf32> to vector<1x8x384xf32>
      %cst_25 = arith.constant dense<0.000000e+00> : vector<8x384xf32>
      %52 = vector.multi_reduction <add>, %51, %cst_25 [0] : vector<1x8x384xf32> to vector<8x384xf32>
      %53 = arith.addf %50, %52 : vector<8x384xf32>
      %c0_26 = arith.constant 0 : index
      %c0_27 = arith.constant 0 : index
      %54 = vector.load %arg5[%c0_26, %c0_27] : memref<8x384xf32, #tpu.memory_space<vmem>>, vector<8x384xf32>
      tpu.vector_store %arg5[%c0_26, %c0_27], %53 {strides = array<i32>} : memref<8x384xf32, #tpu.memory_space<vmem>>, vector<8x384xf32>,
    } else {
    }
    return
  }
  func.func @transform_0(%arg0: i32, %arg1: i32) -> (i32, i32) {
    %c1_i32 = arith.constant 1 : i32
    %0 = arith.muli %arg0, %c1_i32 : i32
    %1 = arith.addi %0, %arg1 : i32
    %c0_i32 = arith.constant 0 : i32
    %2 = arith.minsi %1, %c0_i32 : i32
    %c0_i32_0 = arith.constant 0 : i32
    %c0_i32_1 = arith.constant 0 : i32
    return %2, %c0_i32_0 : i32, i32
  }
  func.func @transform_1(%arg0: i32, %arg1: i32) -> (i32, i32) {
    %c1_i32 = arith.constant 1 : i32
    %0 = arith.muli %arg0, %c1_i32 : i32
    %1 = arith.addi %0, %arg1 : i32
    %c0_i32 = arith.constant 0 : i32
    %2 = arith.minsi %1, %c0_i32 : i32
    %c0_i32_0 = arith.constant 0 : i32
    %c0_i32_1 = arith.constant 0 : i32
    return %2, %c0_i32_0 : i32, i32
  }
  func.func @transform_2(%arg0: i32, %arg1: i32) -> (i32, i32) {
    %c0_i32 = arith.constant 0 : i32
    %c0_i32_0 = arith.constant 0 : i32
    return %arg0, %c0_i32 : i32, i32
  }
  func.func @transform_3(%arg0: i32, %arg1: i32) -> (i32, i32) {
    %c0_i32 = arith.constant 0 : i32
    %c0_i32_0 = arith.constant 0 : i32
    return %arg0, %c0_i32 : i32, i32
  }
}

</mosaic_0001>

<bundles_post_ra>
// kernel: tpu_custom_call.1
= control target key start
LH: loop header
LB: loop body
LE: loop exit
PB: predicated region body
PF: predicated region fallthrough
CT: control target
= control target key end

     0   :  { %9 = vsyncpa [#allocation4], 0  ;;  %s1662_s0 = inlined_call_operand.hbm [shape: f32[8,384], index: 0, kind: input, shape index: {}]   ;;  %s1663_s1 = inlined_call_operand.hbm [shape: f32[8,128], index: 1, kind: input, shape index: {}]   ;;  %s1664_s2 = inlined_call_operand.hbm [shape: f32[8,384], index: 2, kind: output, shape index: {0}]   ;;  %s1665_s3 = inlined_call_operand.hbm [shape: f32[8,384], index: 3, kind: output, shape index: {1}]  }
   0x1   :  { %10 = vsyncpa [#allocation7], 0 }
   0x2   :  { %11 = vsyncpa [#allocation5], 0 }
   0x3   :  { %12 = vsyncpa [#allocation10], 0  ;;  %s1104_s12 = smov [#allocation3]   ;;  %s1105_s14 = smov [#allocation6]  }
   0x4   :  { %s25_s13 = sshll.u32 %s1104_s12, 4  ;;  %s40_s15 = sshll.u32 %s1105_s14, 4  ;;  %s26_s13 = int_to_ptr.vmem [resolvable:$true] %s25_s13  ;;  %s41_s15 = int_to_ptr.vmem [resolvable:$true] %s40_s15 }
   0x5   :  { %s1008_s18 = scalar_lea.hbm %s1662_s0, 384 }
   0x6   :  { %p1009_p0 = scmp.ne.s32.totalorder %s1662_s0, %s1008_s18  ;;  %p1012_p1 = scmp.lt.u32.totalorder %s1008_s18, %s1662_s0 }
   0x8   :  { %p1014_p2 = pnand %p1012_p1, %p1009_p0 }
   0xa   :  { %1017 = shalt.err (!%p1014_p2)
}
   0xb   :  { %s1018_s23 = scalar_lea.vmem %s26_s13, 384  ;;  %p1023_p4 = scmp.lt.s32.totalorder %s26_s13, %s26_s13 }
   0xc   :  { %p1019_p3 = scmp.ne.s32.totalorder %s26_s13, %s1018_s23  ;;  %p1024_p5 = scmp.lt.s32.totalorder %s1018_s23, %s1018_s23 }
   0xe   :  { %p1025_p6 = por %p1024_p5, %p1023_p4 }
  0x10   :  { %p1026_p7 = pnand %p1025_p6, %p1019_p3 }
  0x12   :  { %1029 = shalt.err (!%p1026_p7)
}
  0x13   :  { %28 = dma.hbm_to_vmem [thread:$0]  %s1662_s0, 384, %s26_s13, [#allocation4]  }
  0x14   :  { %s1030_s28 = scalar_lea.hbm %s1663_s1, 128 }
  0x15   :  { %p1031_p8 = scmp.ne.s32.totalorder %s1663_s1, %s1030_s28  ;;  %p1034_p9 = scmp.lt.u32.totalorder %s1030_s28, %s1663_s1 }
  0x17   :  { %p1036_p10 = pnand %p1034_p9, %p1031_p8 }
  0x19   :  { %1039 = shalt.err (!%p1036_p10)
}
  0x1a   :  { %s1040_s6 = scalar_lea.vmem %s41_s15, 128  ;;  %p1045_p12 = scmp.lt.s32.totalorder %s41_s15, %s41_s15 }
  0x1b   :  { %p1041_p11 = scmp.ne.s32.totalorder %s41_s15, %s1040_s6  ;;  %p1046_p13 = scmp.lt.s32.totalorder %s1040_s6, %s1040_s6 }
  0x1d   :  { %p1047_p0 = por %p1046_p13, %p1045_p12 }
  0x1f   :  { %p1048_p1 = pnand %p1047_p0, %p1041_p11 }
  0x21   :  { %1051 = shalt.err (!%p1048_p1)
}
  0x22   :  { %43 = dma.hbm_to_vmem [thread:$0]  %s1663_s1, 128, %s41_s15, [#allocation7]  }
  0x23   :  { %1096 = dma.done.wait [#allocation4], 384  }
  0x24   :  { %1097 = vsyncadd [#allocation4], 4294966912  ;;  %v67_v0 = vlaneseq }
  0x25   :  { %1098 = dma.done.wait [#allocation7], 128  }
  0x26   :  { %1099 = vsyncadd [#allocation7], 4294967168  ;;  %v1106_v1 = vmov 0.0   ;;  %vm1666_vm0 = vmmov 0   ;;  %v1159_v2 = vshrl.u32 %v67_v0, 7  ;;  %v1161_v3 = vand.u32 127, %v67_v0 }
  0x27   :  { %924 = vmatprep.subr.bf16.mxu1 %v1106_v1  ;;  %940 = vmatprep.mubr.msk.bf16.mxu1 %vm1666_vm0, %v1106_v1  ;;  %v1108_v4 = vmov 0   ;;  %v1109_v20 = vmov 1.0|1.0   ;;  %v1710_v24 = vmov 0  ;;  %v1712_v26 = vmov 0  ;;  %s1110_s1 = smov [#allocation8]  }
  0x28   :  { %427 = vmatprep.mubr.bf16.mxu0 %v1108_v4  ;;  %v69_v5 = vadd.s32 8, %v1159_v2  ;;  %v1166_v6 = vadd.s32 128, %v1161_v3  ;;  %v88_v7 = vmul.u32 3, %v1159_v2  ;;  %v1170_v8 = vadd.s32 256, %v1161_v3  ;;  %s725_s8 = sshll.u32 %s1110_s1, 4  ;;  %s1111_s9 = smov [#allocation9]   ;;  %s726_s8 = int_to_ptr.vmem [resolvable:$true] %s725_s8 }
  0x29   :  { %v70_v9 = vadd.s32 16, %v1159_v2  ;;  %v71_v10 = vadd.s32 24, %v1159_v2  ;;  %v72_v19 = vadd.s32 32, %v1159_v2  ;;  %v73_v21 = vadd.s32 40, %v1159_v2  ;;  %s735_s10 = sshll.u32 %s1111_s9, 4  ;;  %s1052_s11 = scalar_lea.vmem %s726_s8, 384  ;;  %s736_s10 = int_to_ptr.vmem [resolvable:$true] %s735_s10 }
  0x2a   :  { %v89_v11 = vmul.u32 3, %v69_v5  ;;  %vm105_vm1 = vcmp.ge.s32.totalorder %v1166_v6, %v88_v7  ;;  %v152_v12 = vadd.s32 3, %v88_v7  ;;  %vm106_vm2 = vcmp.ge.s32.totalorder %v1170_v8, %v88_v7  ;;  %p1053_p2 = scmp.ne.s32.totalorder %s726_s8, %s1052_s11  ;;  %p1057_p3 = scmp.lt.s32.totalorder %s726_s8, %s726_s8 }
  0x2b   :  { %v90_v13 = vmul.u32 3, %v70_v9  ;;  %v91_v15 = vmul.u32 3, %v71_v10  ;;  %vm104_vm13 = vcmp.ge.s32.totalorder %v1161_v3, %v88_v7  ;;  %v74_v29 = vadd.s32 48, %v1159_v2  ;;  %p1058_p4 = scmp.lt.s32.totalorder %s1052_s11, %s1052_s11 }
  0x2c   :  { %vm108_vm3 = vcmp.ge.s32.totalorder %v1166_v6, %v89_v11  ;;  %v153_v14 = vadd.s32 3, %v89_v11  ;;  %vm169_vm4 = vcmp.lt.s32.totalorder %v1166_v6, %v152_v12  ;;  %vm170_vm6 = vcmp.lt.s32.totalorder %v1170_v8, %v152_v12 }
  0x2d   :  { %vm217_vm5 = vmand %vm105_vm1, %vm169_vm4  ;;  %vm109_vm8 = vcmp.ge.s32.totalorder %v1170_v8, %v89_v11  ;;  %v154_v16 = vadd.s32 3, %v90_v13  ;;  %vm168_vm14 = vcmp.lt.s32.totalorder %v1161_v3, %v152_v12  ;;  %v155_v18 = vadd.s32 3, %v91_v15  ;;  %v363_v12 = vld [vmem:[#allocation6] sm:$0xff]  ;;  %p1059_p5 = por %p1058_p4, %p1057_p3 }
  0x2e   :  { %vm172_vm7 = vcmp.lt.s32.totalorder %v1166_v6, %v153_v14  ;;  %vm173_vm9 = vcmp.lt.s32.totalorder %v1170_v8, %v153_v14  ;;  %vm218_vm10 = vmand %vm106_vm2, %vm170_vm6  ;;  %vm107_vm1 = vcmp.ge.s32.totalorder %v1161_v3, %v89_v11  ;;  %vm171_vm2 = vcmp.lt.s32.totalorder %v1161_v3, %v153_v14 }
  0x2f   :  { %vm220_vm11 = vmand %vm108_vm3, %vm172_vm7  ;;  %vm175_vm6 = vcmp.lt.s32.totalorder %v1166_v6, %v154_v16  ;;  %v92_v23 = vmul.u32 3, %v72_v19  ;;  %v93_v25 = vmul.u32 3, %v73_v21  ;;  %v75_v30 = vadd.s32 56, %v1159_v2  ;;  %p1060_p6 = pnand %p1059_p5, %p1053_p2 }
  0x30   :  { %vm1182_vm12 = vmpackc.low %vm220_vm11, %vm217_vm5  ;;  %vm111_vm5 = vcmp.ge.s32.totalorder %v1166_v6, %v90_v13  ;;  %v1714_v31 = vmov 0  ;;  %v94_v32 = vmul.u32 3, %v74_v29  ;;  %v1716_v33 = vmov 0  ;;  %v361_v29 = vld [vmem:[#allocation3 + $0x8] sm:$0xff] }
  0x31   :  { %754 = vmatprep.subr.msk.bf16.mxu0 %vm1182_vm12, %v1109_v20  ;;  %vm221_vm15 = vmand %vm109_vm8, %vm173_vm9  ;;  %vm114_vm8 = vcmp.ge.s32.totalorder %v1166_v6, %v91_v15  ;;  %vm178_vm9 = vcmp.lt.s32.totalorder %v1166_v6, %v155_v18  ;;  %v156_v27 = vadd.s32 3, %v92_v23  ;;  %v157_v28 = vadd.s32 3, %v93_v25 }
  0x32   :  { %vm1195_vm3 = vmpackc.low %vm221_vm15, %vm218_vm10  ;;  %v95_v34 = vmul.u32 3, %v75_v30  ;;  %v1718_v35 = vmov 0  ;;  %v158_v36 = vadd.s32 3, %v94_v32  ;;  %v76_v38 = vadd.s32 64, %v1159_v2 }
  0x33   :  { %925 = vmatpush3.bf16.msk.msra.mxu1 %vm1195_vm3, %v1109_v20  ;;  %vm216_vm4 = vmand %vm104_vm13, %vm168_vm14  ;;  %vm112_vm13 = vcmp.ge.s32.totalorder %v1170_v8, %v90_v13  ;;  %vm176_vm14 = vcmp.lt.s32.totalorder %v1170_v8, %v154_v16  ;;  %v77_v39 = vadd.s32 72, %v1159_v2  ;;  %v1720_v40 = vmov 0 }
  0x34   :  { %vm219_vm7 = vmand %vm107_vm1, %vm171_vm2  ;;  %926 = vmatprep.subr.bf16.mxu1 %v1106_v1  ;;  %vm115_vm1 = vcmp.ge.s32.totalorder %v1170_v8, %v91_v15  ;;  %vm179_vm2 = vcmp.lt.s32.totalorder %v1170_v8, %v155_v18  ;;  %v159_v37 = vadd.s32 3, %v95_v34  ;;  %v96_v41 = vmul.u32 3, %v76_v38 }
  0x35   :  { %vm1207_vm10 = vmpackc.low %vm219_vm7, %vm216_vm4  ;;  %v1722_v42 = vmov 0  ;;  %v97_v43 = vmul.u32 3, %v77_v39  ;;  %v1724_v44 = vmov 0  ;;  %v78_v47 = vadd.s32 80, %v1159_v2 }
  0x36   :  { %v1711_v24 = vsel %vm1207_vm10, 4294967295, %v1710_v24  ;;  %756 = vmatpush1.bf16.msk.msra.mxu0 %vm1207_vm10, %v1109_v20  ;;  %vm223_vm11 = vmand %vm111_vm5, %vm175_vm6  ;;  %vm110_vm5 = vcmp.ge.s32.totalorder %v1161_v3, %v90_v13  ;;  %vm174_vm6 = vcmp.lt.s32.totalorder %v1161_v3, %v154_v16  ;;  %v160_v45 = vadd.s32 3, %v96_v41 }
  0x37   :  { %vm226_vm15 = vmand %vm114_vm8, %vm178_vm9  ;;  %vm113_vm8 = vcmp.ge.s32.totalorder %v1161_v3, %v91_v15  ;;  %vm177_vm9 = vcmp.lt.s32.totalorder %v1161_v3, %v155_v18  ;;  %v161_v46 = vadd.s32 3, %v97_v43  ;;  %v79_v48 = vadd.s32 88, %v1159_v2 }
  0x38   :  { %vm1218_vm0 = vmpackc.low %vm226_vm15, %vm223_vm11  ;;  %vm181_vm15 = vcmp.lt.s32.totalorder %v1166_v6, %v156_v27  ;;  %v1726_v49 = vmov 0  ;;  %v98_v50 = vmul.u32 3, %v78_v47  ;;  %v1728_v51 = vmov 0 }
  0x39   :  { %v1713_v26 = vsel %vm1218_vm0, 4294967295, %v1712_v26  ;;  %758 = vmatprep.subr.msk.bf16.mxu0 %vm1218_vm0, %v1109_v20  ;;  %vm224_vm4 = vmand %vm112_vm13, %vm176_vm14  ;;  %vm117_vm14 = vcmp.ge.s32.totalorder %v1166_v6, %v92_v23  ;;  %vm184_vm0 = vcmp.lt.s32.totalorder %v1166_v6, %v157_v28  ;;  %v99_v52 = vmul.u32 3, %v79_v48 }
  0x3a   :  { %vm227_vm7 = vmand %vm115_vm1, %vm179_vm2  ;;  %vm120_vm2 = vcmp.ge.s32.totalorder %v1166_v6, %v93_v25  ;;  %v1730_v53 = vmov 0  ;;  %v162_v54 = vadd.s32 3, %v98_v50  ;;  %v80_v56 = vadd.s32 96, %v1159_v2 }
  0x3b   :  { %vm1231_vm11 = vmpackc.low %vm227_vm7, %vm224_vm4  ;;  %vm182_vm7 = vcmp.lt.s32.totalorder %v1170_v8, %v156_v27  ;;  %v163_v55 = vadd.s32 3, %v99_v52  ;;  %v81_v57 = vadd.s32 104, %v1159_v2  ;;  %v1732_v58 = vmov 0 }
  0x3c   :  { %v1715_v31 = vsel %vm1231_vm11, 4294967295, %v1714_v31  ;;  %927 = vmatpush3.bf16.msk.msra.mxu1 %vm1231_vm11, %v1109_v20  ;;  %vm222_vm13 = vmand %vm110_vm5, %vm174_vm6  ;;  %vm118_vm6 = vcmp.ge.s32.totalorder %v1170_v8, %v92_v23  ;;  %vm185_vm11 = vcmp.lt.s32.totalorder %v1170_v8, %v157_v28  ;;  %v100_v59 = vmul.u32 3, %v80_v56 }
  0x3d   :  { %vm225_vm1 = vmand %vm113_vm8, %vm177_vm9  ;;  %928 = vmatprep.subr.bf16.mxu1 %v1106_v1  ;;  %vm121_vm9 = vcmp.ge.s32.totalorder %v1170_v8, %v93_v25  ;;  %v1734_v60 = vmov 0  ;;  %v101_v61 = vmul.u32 3, %v81_v57  ;;  %v1736_v62 = vmov 0 }
  0x3e   :  { %vm1243_vm4 = vmpackc.low %vm225_vm1, %vm222_vm13  ;;  %vm119_vm1 = vcmp.ge.s32.totalorder %v1161_v3, %v93_v25  ;;  %v164_v63 = vadd.s32 3, %v100_v59  ;;  %v82_v5 = vadd.s32 112, %v1159_v2  ;;  %v83_v7 = vadd.s32 120, %v1159_v2 }
  0x3f   :  { %v1717_v33 = vsel %vm1243_vm4, 4294967295, %v1716_v33  ;;  %760 = vmatpush1.bf16.msk.msra.mxu0 %vm1243_vm4, %v1109_v20  ;;  %vm229_vm5 = vmand %vm117_vm14, %vm181_vm15  ;;  %vm116_vm14 = vcmp.ge.s32.totalorder %v1161_v3, %v92_v23  ;;  %vm180_vm15 = vcmp.lt.s32.totalorder %v1161_v3, %v156_v27  ;;  %v165_v0 = vadd.s32 3, %v101_v61 }
  0x40   :  { %vm232_vm8 = vmand %vm120_vm2, %vm184_vm0  ;;  %vm183_vm2 = vcmp.lt.s32.totalorder %v1161_v3, %v157_v28  ;;  %v1738_v9 = vmov 0  ;;  %v102_v2 = vmul.u32 3, %v82_v5  ;;  %v1740_v10 = vmov 0 }
  0x41   :  { %vm1254_vm10 = vmpackc.low %vm232_vm8, %vm229_vm5  ;;  %vm187_vm8 = vcmp.lt.s32.totalorder %v1166_v6, %v158_v36  ;;  %v103_v11 = vmul.u32 3, %v83_v7  ;;  %v1742_v13 = vmov 0  ;;  %v1402_v15 = vpack.c.bf16 %v363_v12, %v363_v12 }
  0x42   :  { %v1719_v35 = vsel %vm1254_vm10, 4294967295, %v1718_v35  ;;  %762 = vmatprep.subr.msk.bf16.mxu0 %vm1254_vm10, %v1109_v20  ;;  %vm230_vm13 = vmand %vm118_vm6, %vm182_vm7  ;;  %vm123_vm7 = vcmp.ge.s32.totalorder %v1166_v6, %v94_v32  ;;  %vm190_vm10 = vcmp.lt.s32.totalorder %v1166_v6, %v159_v37  ;;  %v166_v14 = vadd.s32 3, %v102_v2 }
  0x43   :  { %vm233_vm0 = vmand %vm121_vm9, %vm185_vm11  ;;  %vm126_vm9 = vcmp.ge.s32.totalorder %v1166_v6, %v95_v34  ;;  %v167_v16 = vadd.s32 3, %v103_v11  ;;  %v1744_v18 = vmov 0  ;;  %v389_v19 = vunpack.c.l.bf16 %v1402_v15 }
  0x44   :  { %vm1267_vm5 = vmpackc.low %vm233_vm0, %vm230_vm13  ;;  %vm188_vm0 = vcmp.lt.s32.totalorder %v1170_v8, %v158_v36  ;;  %v1746_v21 = vmov 0 }
  0x45   :  { %v1721_v40 = vsel %vm1267_vm5, 4294967295, %v1720_v40  ;;  %929 = vmatpush3.bf16.msk.msra.mxu1 %vm1267_vm5, %v1109_v20  ;;  %vm228_vm6 = vmand %vm116_vm14, %vm180_vm15  ;;  %vm124_vm15 = vcmp.ge.s32.totalorder %v1170_v8, %v94_v32  ;;  %vm191_vm5 = vcmp.lt.s32.totalorder %v1170_v8, %v159_v37  ;;  %v1435_v23 = vsub.f32 %v363_v12, %v389_v19 }
  0x46   :  { %vm231_vm11 = vmand %vm119_vm1, %vm183_vm2  ;;  %930 = vmatprep.subr.bf16.mxu1 %v1106_v1  ;;  %vm127_vm2 = vcmp.ge.s32.totalorder %v1170_v8, %v95_v34 }
  0x47   :  { %vm1279_vm13 = vmpackc.low %vm231_vm11, %vm228_vm6  ;;  %vm125_vm11 = vcmp.ge.s32.totalorder %v1161_v3, %v95_v34  ;;  %v1454_v25 = vpack.c.bf16 %v1435_v23, %v1435_v23 }
  0x48   :  { %v1723_v42 = vsel %vm1279_vm13, 4294967295, %v1722_v42  ;;  %764 = vmatpush1.bf16.msk.msra.mxu0 %vm1279_vm13, %v1109_v20  ;;  %vm235_vm14 = vmand %vm123_vm7, %vm187_vm8  ;;  %vm122_vm7 = vcmp.ge.s32.totalorder %v1161_v3, %v94_v32  ;;  %vm186_vm8 = vcmp.lt.s32.totalorder %v1161_v3, %v158_v36 }
  0x49   :  { %vm238_vm1 = vmand %vm126_vm9, %vm190_vm10  ;;  %vm189_vm9 = vcmp.lt.s32.totalorder %v1161_v3, %v159_v37 }
  0x4a   :  { %vm1290_vm4 = vmpackc.low %vm238_vm1, %vm235_vm14  ;;  %vm193_vm1 = vcmp.lt.s32.totalorder %v1166_v6, %v160_v45 }
  0x4b   :  { %v1725_v44 = vsel %vm1290_vm4, 4294967295, %v1724_v44  ;;  %766 = vmatprep.subr.msk.bf16.mxu0 %vm1290_vm4, %v1109_v20  ;;  %vm236_vm6 = vmand %vm124_vm15, %vm188_vm0  ;;  %vm129_vm0 = vcmp.ge.s32.totalorder %v1166_v6, %v96_v41  ;;  %vm196_vm4 = vcmp.lt.s32.totalorder %v1166_v6, %v161_v46 }
  0x4c   :  { %vm239_vm10 = vmand %vm127_vm2, %vm191_vm5  ;;  %vm132_vm2 = vcmp.ge.s32.totalorder %v1166_v6, %v97_v43 }
  0x4d   :  { %vm1303_vm14 = vmpackc.low %vm239_vm10, %vm236_vm6  ;;  %vm194_vm10 = vcmp.lt.s32.totalorder %v1170_v8, %v160_v45 }
  0x4e   :  { %v1727_v49 = vsel %vm1303_vm14, 4294967295, %v1726_v49  ;;  %931 = vmatpush3.bf16.msk.msra.mxu1 %vm1303_vm14, %v1109_v20  ;;  %vm234_vm15 = vmand %vm122_vm7, %vm186_vm8  ;;  %vm130_vm8 = vcmp.ge.s32.totalorder %v1170_v8, %v96_v41  ;;  %vm197_vm14 = vcmp.lt.s32.totalorder %v1170_v8, %v161_v46 }
  0x4f   :  { %vm237_vm5 = vmand %vm125_vm11, %vm189_vm9  ;;  %932 = vmatprep.subr.bf16.mxu1 %v1106_v1  ;;  %vm133_vm9 = vcmp.ge.s32.totalorder %v1170_v8, %v97_v43 }
  0x50   :  { %vm1315_vm6 = vmpackc.low %vm237_vm5, %vm234_vm15  ;;  %vm131_vm5 = vcmp.ge.s32.totalorder %v1161_v3, %v97_v43 }
  0x51   :  { %v1729_v51 = vsel %vm1315_vm6, 4294967295, %v1728_v51  ;;  %768 = vmatpush1.bf16.msk.msra.mxu0 %vm1315_vm6, %v1109_v20  ;;  %vm241_vm7 = vmand %vm129_vm0, %vm193_vm1  ;;  %vm128_vm0 = vcmp.ge.s32.totalorder %v1161_v3, %v96_v41  ;;  %vm192_vm1 = vcmp.lt.s32.totalorder %v1161_v3, %v160_v45 }
  0x52   :  { %vm244_vm11 = vmand %vm132_vm2, %vm196_vm4  ;;  %vm195_vm2 = vcmp.lt.s32.totalorder %v1161_v3, %v161_v46 }
  0x53   :  { %vm1326_vm13 = vmpackc.low %vm244_vm11, %vm241_vm7  ;;  %vm199_vm11 = vcmp.lt.s32.totalorder %v1166_v6, %v162_v54 }
  0x54   :  { %v1731_v53 = vsel %vm1326_vm13, 4294967295, %v1730_v53  ;;  %770 = vmatprep.subr.msk.bf16.mxu0 %vm1326_vm13, %v1109_v20  ;;  %vm242_vm15 = vmand %vm130_vm8, %vm194_vm10  ;;  %vm135_vm10 = vcmp.ge.s32.totalorder %v1166_v6, %v98_v50  ;;  %vm202_vm13 = vcmp.lt.s32.totalorder %v1166_v6, %v163_v55 }
  0x55   :  { %vm245_vm4 = vmand %vm133_vm9, %vm197_vm14  ;;  %vm138_vm9 = vcmp.ge.s32.totalorder %v1166_v6, %v99_v52 }
  0x56   :  { %vm1339_vm7 = vmpackc.low %vm245_vm4, %vm242_vm15  ;;  %vm200_vm4 = vcmp.lt.s32.totalorder %v1170_v8, %v162_v54 }
  0x57   :  { %v1733_v58 = vsel %vm1339_vm7, 4294967295, %v1732_v58  ;;  %933 = vmatpush3.bf16.msk.msra.mxu1 %vm1339_vm7, %v1109_v20  ;;  %vm240_vm8 = vmand %vm128_vm0, %vm192_vm1  ;;  %vm136_vm1 = vcmp.ge.s32.totalorder %v1170_v8, %v98_v50  ;;  %vm203_vm7 = vcmp.lt.s32.totalorder %v1170_v8, %v163_v55 }
  0x58   :  { %vm243_vm14 = vmand %vm131_vm5, %vm195_vm2  ;;  %934 = vmatprep.subr.bf16.mxu1 %v1106_v1  ;;  %vm139_vm2 = vcmp.ge.s32.totalorder %v1170_v8, %v99_v52 }
  0x59   :  { %vm1351_vm15 = vmpackc.low %vm243_vm14, %vm240_vm8  ;;  %vm137_vm14 = vcmp.ge.s32.totalorder %v1161_v3, %v99_v52 }
  0x5a   :  { %v1735_v60 = vsel %vm1351_vm15, 4294967295, %v1734_v60  ;;  %772 = vmatpush1.bf16.msk.msra.mxu0 %vm1351_vm15, %v1109_v20  ;;  %vm247_vm0 = vmand %vm135_vm10, %vm199_vm11  ;;  %vm134_vm10 = vcmp.ge.s32.totalorder %v1161_v3, %v98_v50  ;;  %vm198_vm11 = vcmp.lt.s32.totalorder %v1161_v3, %v162_v54 }
  0x5b   :  { %vm250_vm5 = vmand %vm138_vm9, %vm202_vm13  ;;  %vm201_vm9 = vcmp.lt.s32.totalorder %v1161_v3, %v163_v55 }
  0x5c   :  { %vm1362_vm6 = vmpackc.low %vm250_vm5, %vm247_vm0  ;;  %vm205_vm5 = vcmp.lt.s32.totalorder %v1166_v6, %v164_v63 }
  0x5d   :  { %v1737_v62 = vsel %vm1362_vm6, 4294967295, %v1736_v62  ;;  %774 = vmatprep.subr.msk.bf16.mxu0 %vm1362_vm6, %v1109_v20  ;;  %vm248_vm8 = vmand %vm136_vm1, %vm200_vm4  ;;  %vm141_vm4 = vcmp.ge.s32.totalorder %v1166_v6, %v100_v59  ;;  %vm208_vm6 = vcmp.lt.s32.totalorder %v1166_v6, %v165_v0 }
  0x5e   :  { %vm251_vm13 = vmand %vm139_vm2, %vm203_vm7  ;;  %vm144_vm2 = vcmp.ge.s32.totalorder %v1166_v6, %v101_v61 }
  0x5f   :  { %vm1375_vm0 = vmpackc.low %vm251_vm13, %vm248_vm8  ;;  %vm206_vm13 = vcmp.lt.s32.totalorder %v1170_v8, %v164_v63 }
  0x60   :  { %v1739_v9 = vsel %vm1375_vm0, 4294967295, %v1738_v9  ;;  %935 = vmatpush3.bf16.msk.msra.mxu1 %vm1375_vm0, %v1109_v20  ;;  %vm246_vm1 = vmand %vm134_vm10, %vm198_vm11  ;;  %vm142_vm11 = vcmp.ge.s32.totalorder %v1170_v8, %v100_v59  ;;  %vm209_vm0 = vcmp.lt.s32.totalorder %v1170_v8, %v165_v0 }
  0x61   :  { %vm249_vm7 = vmand %vm137_vm14, %vm201_vm9  ;;  %936 = vmatprep.subr.bf16.mxu1 %v1106_v1  ;;  %vm145_vm9 = vcmp.ge.s32.totalorder %v1170_v8, %v101_v61 }
  0x62   :  { %vm1387_vm8 = vmpackc.low %vm249_vm7, %vm246_vm1 }
  0x63   :  { %v1741_v10 = vsel %vm1387_vm8, 4294967295, %v1740_v10  ;;  %776 = vmatpush1.bf16.msk.msra.mxu0 %vm1387_vm8, %v1109_v20  ;;  %vm253_vm10 = vmand %vm141_vm4, %vm205_vm5  ;;  %vm140_vm5 = vcmp.ge.s32.totalorder %v1161_v3, %v100_v59  ;;  %vm215_vm8 = vcmp.lt.s32.totalorder %v1170_v8, %v167_v16 }
  0x64   :  { %vm256_vm14 = vmand %vm144_vm2, %vm208_vm6  ;;  %vm204_vm6 = vcmp.lt.s32.totalorder %v1161_v3, %v164_v63  ;;  %vm143_vm2 = vcmp.ge.s32.totalorder %v1161_v3, %v101_v61 }
  0x65   :  { %vm1398_vm1 = vmpackc.low %vm256_vm14, %vm253_vm10  ;;  %vm207_vm10 = vcmp.lt.s32.totalorder %v1161_v3, %v165_v0 }
  0x66   :  { %v1743_v13 = vsel %vm1398_vm1, 4294967295, %v1742_v13  ;;  %778 = vmatprep.subr.msk.bf16.mxu0 %vm1398_vm1, %v1109_v20  ;;  %vm254_vm4 = vmand %vm142_vm11, %vm206_vm13  ;;  %vm147_vm11 = vcmp.ge.s32.totalorder %v1166_v6, %v102_v2  ;;  %vm211_vm13 = vcmp.lt.s32.totalorder %v1166_v6, %v166_v14 }
  0x67   :  { %vm257_vm7 = vmand %vm145_vm9, %vm209_vm0  ;;  %vm150_vm9 = vcmp.ge.s32.totalorder %v1166_v6, %v103_v11 }
  0x68   :  { %vm1411_vm14 = vmpackc.low %vm257_vm7, %vm254_vm4  ;;  %vm214_vm4 = vcmp.lt.s32.totalorder %v1166_v6, %v167_v16 }
  0x69   :  { %v1745_v18 = vsel %vm1411_vm14, 4294967295, %v1744_v18  ;;  %937 = vmatpush3.bf16.msk.msra.mxu1 %vm1411_vm14, %v1109_v20  ;;  %vm252_vm1 = vmand %vm140_vm5, %vm204_vm6  ;;  %vm148_vm6 = vcmp.ge.s32.totalorder %v1170_v8, %v102_v2  ;;  %vm212_vm14 = vcmp.lt.s32.totalorder %v1170_v8, %v166_v14 }
  0x6a   :  { %vm255_vm0 = vmand %vm143_vm2, %vm207_vm10  ;;  %938 = vmatprep.subr.bf16.mxu1 %v1106_v1  ;;  %vm151_vm10 = vcmp.ge.s32.totalorder %v1170_v8, %v103_v11 }
  0x6b   :  { %vm1424_vm7 = vmpackc.low %vm255_vm0, %vm252_vm1  ;;  %vm210_vm0 = vcmp.lt.s32.totalorder %v1161_v3, %v166_v14 }
  0x6c   :  { %v1747_v21 = vsel %vm1424_vm7, 4294967295, %v1746_v21  ;;  %780 = vmatpush1.bf16.msk.msra.mxu0 %vm1424_vm7, %v1109_v20  ;;  %vm259_vm5 = vmand %vm147_vm11, %vm211_vm13  ;;  %vm146_vm13 = vcmp.ge.s32.totalorder %v1161_v3, %v102_v2  ;;  %vm213_vm7 = vcmp.lt.s32.totalorder %v1161_v3, %v167_v16 }
  0x6d   :  { %vm262_vm2 = vmand %vm150_vm9, %vm214_vm4  ;;  %vm149_vm4 = vcmp.ge.s32.totalorder %v1161_v3, %v103_v11  ;;  %v392_v3 = vunpack.c.l.bf16 %v1454_v25 }
  0x6e   :  { %vm1437_vm1 = vmpackc.low %vm262_vm2, %vm259_vm5  ;;  %vm1756_vm2 = vnez %v1713_v26  ;;  %v360_v26 = vld [vmem:[#allocation3] sm:$0xff] }
  0x6f   :  { %782 = vmatprep.subr.msk.bf16.mxu0 %vm1437_vm1, %v1109_v20  ;;  %vm260_vm11 = vmand %vm148_vm6, %vm212_vm14  ;;  %vm1755_vm6 = vnez %v1711_v24 }
  0x70   :  { %vm263_vm9 = vmand %vm151_vm10, %vm215_vm8  ;;  %vm1757_vm10 = vnez %v1715_v31 }
  0x71   :  { %vm1448_vm15 = vmpackc.low %vm263_vm9, %vm260_vm11  ;;  %vm1758_vm11 = vnez %v1717_v33  ;;  %vm1761_vm9 = vnez %v1723_v42 }
  0x72   :  { %939 = vmatpush3.bf16.msk.msra.mxu1 %vm1448_vm15, %v1109_v20  ;;  %vm258_vm14 = vmand %vm146_vm13, %vm210_vm0  ;;  %vm1759_vm13 = vnez %v1719_v35  ;;  %vm1760_vm0 = vnez %v1721_v40 }
  0x73   :  { %vm261_vm5 = vmand %vm149_vm4, %vm213_vm7  ;;  %944 = vmatprep.subr.bf16.mxu1 %v1106_v1  ;;  %vm1754_vm7 = vmmov 0   ;;  %vm1762_vm4 = vnez %v1725_v44 }
  0x74   :  { %vm1460_vm8 = vmpackc.low %vm261_vm5, %vm258_vm14  ;;  %vm1763_vm14 = vnez %v1727_v49  ;;  %vm1764_vm5 = vnez %v1729_v51 }
  0x75   :  { %784 = vmatpush1.bf16.msk.msra.mxu0 %vm1460_vm8, %v1109_v20  ;;  %941 = vmatmul.mubr.bf16.vlgmr.msra.gmra.mrb[0].mxu1 %v1454_v25 }
  0x76   :  { %802 = vmatprep.subr.msk.bf16.mxu0 %vm1182_vm12, %v1109_v20  ;;  %945 = vmatpush3.bf16.msk.msra.mxu1 %vm1195_vm3, %v1109_v20 }
  0x77   :  { %946 = vmatprep.subr.bf16.mxu1 %v1106_v1  ;;  %960 = vmatprep.mubr.msk.bf16.mxu1 %vm1754_vm7, %v1106_v1 }
  0x78   :  { %428 = vmatmul.mubr.bf16.vlgmr.msra.gmra.mrb[0].mxu0 %v1454_v25 }
  0x79   :  { %804 = vmatpush1.bf16.msk.msra.mxu0 %vm1755_vm6, %v1109_v20  ;;  %508 = vmatprep.mubr.bf16.mxu0 %v1108_v4 }
  0x7a   :  { %806 = vmatprep.subr.msk.bf16.mxu0 %vm1756_vm2, %v1109_v20  ;;  %947 = vmatpush3.bf16.msk.msra.mxu1 %vm1757_vm10, %v1109_v20 }
  0x7b   :  { %948 = vmatprep.subr.bf16.mxu1 %v1106_v1 }
  0x7d   :  { %808 = vmatpush1.bf16.msk.msra.mxu0 %vm1758_vm11, %v1109_v20 }
  0x7e   :  { %810 = vmatprep.subr.msk.bf16.mxu0 %vm1759_vm13, %v1109_v20  ;;  %949 = vmatpush3.bf16.msk.msra.mxu1 %vm1760_vm0, %v1109_v20  ;;  %vm1765_vm0 = vnez %v1731_v53 }
  0x7f   :  { %950 = vmatprep.subr.bf16.mxu1 %v1106_v1 }
  0x81   :  { %812 = vmatpush1.bf16.msk.msra.mxu0 %vm1761_vm9, %v1109_v20  ;;  %vm1766_vm9 = vnez %v1733_v58 }
  0x82   :  { %814 = vmatprep.subr.msk.bf16.mxu0 %vm1762_vm4, %v1109_v20  ;;  %951 = vmatpush3.bf16.msk.msra.mxu1 %vm1763_vm14, %v1109_v20  ;;  %vm1767_vm4 = vnez %v1735_v60  ;;  %vm1768_vm14 = vnez %v1737_v62 }
  0x83   :  { %952 = vmatprep.subr.bf16.mxu1 %v1106_v1 }
  0x85   :  { %816 = vmatpush1.bf16.msk.msra.mxu0 %vm1764_vm5, %v1109_v20  ;;  %vm1769_vm5 = vnez %v1739_v9 }
  0x86   :  { %818 = vmatprep.subr.msk.bf16.mxu0 %vm1765_vm0, %v1109_v20  ;;  %953 = vmatpush3.bf16.msk.msra.mxu1 %vm1766_vm9, %v1109_v20  ;;  %vm1770_vm0 = vnez %v1741_v10  ;;  %vm1771_vm9 = vnez %v1743_v13 }
  0x87   :  { %954 = vmatprep.subr.bf16.mxu1 %v1106_v1 }
  0x89   :  { %820 = vmatpush1.bf16.msk.msra.mxu0 %vm1767_vm4, %v1109_v20  ;;  %vm1772_vm4 = vnez %v1745_v18 }
  0x8a   :  { %822 = vmatprep.subr.msk.bf16.mxu0 %vm1768_vm14, %v1109_v20  ;;  %955 = vmatpush3.bf16.msk.msra.mxu1 %vm1769_vm5, %v1109_v20  ;;  %vm1773_vm14 = vnez %v1747_v21 }
  0x8b   :  { %956 = vmatprep.subr.bf16.mxu1 %v1106_v1 }
  0x8d   :  { %824 = vmatpush1.bf16.msk.msra.mxu0 %vm1770_vm0, %v1109_v20 }
  0x8e   :  { %826 = vmatprep.subr.msk.bf16.mxu0 %vm1771_vm9, %v1109_v20  ;;  %957 = vmatpush3.bf16.msk.msra.mxu1 %vm1772_vm4, %v1109_v20 }
  0x8f   :  { %958 = vmatprep.subr.bf16.mxu1 %v1106_v1 }
  0x91   :  { %828 = vmatpush1.bf16.msk.msra.mxu0 %vm1773_vm14, %v1109_v20 }
  0x92   :  { %830 = vmatprep.subr.msk.bf16.mxu0 %vm1437_vm1, %v1109_v20  ;;  %959 = vmatpush3.bf16.msk.msra.mxu1 %vm1448_vm15, %v1109_v20 }
  0x93   :  { %964 = vmatprep.subr.bf16.mxu1 %v1106_v1 }
  0x95   :  { %832 = vmatpush1.bf16.msk.msra.mxu0 %vm1460_vm8, %v1109_v20  ;;  %961 = vmatmul.mubr.bf16.vlgmr.msra.gmra.mrb[0].mxu1 %v1402_v15 }
  0x96   :  { %850 = vmatprep.subr.msk.bf16.mxu0 %vm1182_vm12, %v1109_v20  ;;  %965 = vmatpush3.bf16.msk.msra.mxu1 %vm1195_vm3, %v1109_v20  ;;  %vm1774_vm12 = vnez %v1721_v40  ;;  %vm1775_vm3 = vnez %v1723_v42 }
  0x97   :  { %966 = vmatprep.subr.bf16.mxu1 %v1106_v1  ;;  %980 = vmatprep.mubr.msk.bf16.mxu1 %vm1754_vm7, %v1106_v1  ;;  %vm1776_vm7 = vnez %v1725_v44 }
  0x98   :  { %509 = vmatmul.mubr.bf16.vlgmr.msra.gmra.mrb[0].mxu0 %v1402_v15 }
  0x99   :  { %852 = vmatpush1.bf16.msk.msra.mxu0 %vm1755_vm6, %v1109_v20  ;;  %589 = vmatprep.mubr.bf16.mxu0 %v1108_v4  ;;  %vm1777_vm6 = vnez %v1727_v49  ;;  %v393_v4 = vsub.f32 %v1435_v23, %v392_v3 }
  0x9a   :  { %854 = vmatprep.subr.msk.bf16.mxu0 %vm1756_vm2, %v1109_v20  ;;  %967 = vmatpush3.bf16.msk.msra.mxu1 %vm1757_vm10, %v1109_v20  ;;  %vm1778_vm2 = vnez %v1729_v51  ;;  %vm1779_vm10 = vnez %v1731_v53 }
  0x9b   :  { %968 = vmatprep.subr.bf16.mxu1 %v1106_v1  ;;  %v394_v17 = vpack.c.bf16 %v393_v4, %v393_v4 }
  0x9d   :  { %856 = vmatpush1.bf16.msk.msra.mxu0 %vm1758_vm11, %v1109_v20  ;;  %vm1780_vm11 = vnez %v1733_v58 }
  0x9e   :  { %858 = vmatprep.subr.msk.bf16.mxu0 %vm1759_vm13, %v1109_v20  ;;  %969 = vmatpush3.bf16.msk.msra.mxu1 %vm1774_vm12, %v1109_v20  ;;  %vm1781_vm13 = vnez %v1735_v60  ;;  %vm1782_vm12 = vnez %v1737_v62 }
  0x9f   :  { %970 = vmatprep.subr.bf16.mxu1 %v1106_v1 }
  0xa1   :  { %860 = vmatpush1.bf16.msk.msra.mxu0 %vm1775_vm3, %v1109_v20 }
  0xa2   :  { %862 = vmatprep.subr.msk.bf16.mxu0 %vm1776_vm7, %v1109_v20  ;;  %971 = vmatpush3.bf16.msk.msra.mxu1 %vm1777_vm6, %v1109_v20 }
  0xa3   :  { %972 = vmatprep.subr.bf16.mxu1 %v1106_v1 }
  0xa5   :  { %864 = vmatpush1.bf16.msk.msra.mxu0 %vm1778_vm2, %v1109_v20 }
  0xa6   :  { %866 = vmatprep.subr.msk.bf16.mxu0 %vm1779_vm10, %v1109_v20  ;;  %973 = vmatpush3.bf16.msk.msra.mxu1 %vm1780_vm11, %v1109_v20 }
  0xa7   :  { %974 = vmatprep.subr.bf16.mxu1 %v1106_v1 }
  0xa9   :  { %868 = vmatpush1.bf16.msk.msra.mxu0 %vm1781_vm13, %v1109_v20 }
  0xaa   :  { %870 = vmatprep.subr.msk.bf16.mxu0 %vm1782_vm12, %v1109_v20  ;;  %975 = vmatpush3.bf16.msk.msra.mxu1 %vm1769_vm5, %v1109_v20 }
  0xab   :  { %976 = vmatprep.subr.bf16.mxu1 %v1106_v1 }
  0xad   :  { %872 = vmatpush1.bf16.msk.msra.mxu0 %vm1770_vm0, %v1109_v20 }
  0xae   :  { %874 = vmatprep.subr.msk.bf16.mxu0 %vm1771_vm9, %v1109_v20  ;;  %977 = vmatpush3.bf16.msk.msra.mxu1 %vm1772_vm4, %v1109_v20 }
  0xaf   :  { %978 = vmatprep.subr.bf16.mxu1 %v1106_v1  ;;  %v362_v1 = vld [vmem:[#allocation3 + $0x10] sm:$0xff] }
  0xb1   :  { %876 = vmatpush1.bf16.msk.msra.mxu0 %vm1773_vm14, %v1109_v20 }
  0xb2   :  { %878 = vmatprep.subr.msk.bf16.mxu0 %vm1437_vm1, %v1109_v20  ;;  %979 = vmatpush3.bf16.msk.msra.mxu1 %vm1448_vm15, %v1109_v20 }
  0xb5   :  { %880 = vmatpush1.bf16.msk.msra.mxu0 %vm1460_vm8, %v1109_v20  ;;  %981 = vmatmul.mubr.bf16.vlgmr.msra.gmra.mrb[0].mxu1 %v394_v17 }
  0xb8   :  { %590 = vmatmul.mubr.bf16.vlgmr.msra.gmra.mrb[0].mxu0 %v394_v17 }
 0x188   :  { %v632_v22 = vpop.f32.mrb[0].mxu1 }
 0x189   :  { %v643_v24 = vsub.f32 %v362_v1, %v632_v22  ;;  %v982_v28 = vpop.f32.mrb[1].mxu1 }
 0x18a   :  { %v635_v30 = vpop.f32.mrb[2].mxu1 }
 0x18b   :  { %v646_v31 = vmax.f32 %v643_v24, 0.0  ;;  %v591_v32 = vpop.f32.mrb[0].mxu0  ;;  %v983_v33 = vpop.f32.mrb[3].mxu1  ;;  %665 = vst [vmem:[#allocation8 + $0x10] sm:$0xff] %v643_v24 }
 0x18c   :  { %v641_v34 = vsub.f32 %v360_v26, %v591_v32  ;;  %v593_v35 = vpop.f32.mrb[1].mxu0 }
 0x18d   :  { %v642_v36 = vsub.f32 %v361_v29, %v593_v35  ;;  %v595_v37 = vpop.f32.mrb[2].mxu0  ;;  %677 = vst [vmem:[#allocation9 + $0x10] sm:$0xff] %v646_v31 }
 0x18e   :  { %v644_v20 = vmax.f32 %v641_v34, 0.0  ;;  %v596_v38 = vpop.f32.mrb[3].mxu0  ;;  %663 = vst [vmem:[#allocation8] sm:$0xff] %v641_v34 }
 0x18f   :  { %v645_v39 = vmax.f32 %v642_v36, 0.0  ;;  %664 = vst [vmem:[#allocation8 + $0x8] sm:$0xff] %v642_v36 }
 0x190   :  { %675 = vst [vmem:[#allocation9] sm:$0xff] %v644_v20 }
 0x191   :  { %1063 = shalt.err (!%p1060_p6)
}
 0x192   :  { %s1064_s14 = scalar_lea.hbm %s1664_s2, 384 }
 0x193   :  { %p1065_p7 = scmp.ne.s32.totalorder %s1664_s2, %s1064_s14  ;;  %p1068_p8 = scmp.lt.u32.totalorder %s1064_s14, %s1664_s2 }
 0x195   :  { %p1070_p9 = pnand %p1068_p8, %p1065_p7 }
 0x197   :  { %1073 = shalt.err (!%p1070_p9)
}
 0x198   :  { %728 = dma.vmem_to_hbm [thread:$0]  %s726_s8, 384, %s1664_s2, [#allocation5]   ;;  %676 = vst [vmem:[#allocation9 + $0x8] sm:$0xff] %v645_v39 }
 0x199   :  { %s1074_s21 = scalar_lea.vmem %s736_s10, 384  ;;  %p1079_p11 = scmp.lt.s32.totalorder %s736_s10, %s736_s10 }
 0x19a   :  { %p1075_p10 = scmp.ne.s32.totalorder %s736_s10, %s1074_s21  ;;  %p1080_p12 = scmp.lt.s32.totalorder %s1074_s21, %s1074_s21 }
 0x19c   :  { %p1081_p13 = por %p1080_p12, %p1079_p11 }
 0x19e   :  { %p1082_p0 = pnand %p1081_p13, %p1075_p10 }
 0x1a0   :  { %1085 = shalt.err (!%p1082_p0)
}
 0x1a1   :  { %s1086_s24 = scalar_lea.hbm %s1665_s3, 384 }
 0x1a2   :  { %p1087_p1 = scmp.ne.s32.totalorder %s1665_s3, %s1086_s24  ;;  %p1090_p2 = scmp.lt.u32.totalorder %s1086_s24, %s1665_s3 }
 0x1a4   :  { %p1092_p3 = pnand %p1090_p2, %p1087_p1 }
 0x1a6   :  { %1095 = shalt.err (!%p1092_p3)
}
 0x1a7   :  { %738 = dma.vmem_to_hbm [thread:$0]  %s736_s10, 384, %s1665_s3, [#allocation10]  }
 0x1a8   :  { %1100 = dma.done.wait [#allocation5], 384  }
 0x1a9   :  { %1101 = vsyncadd [#allocation5], 4294966912 }
 0x1aa   :  { %1102 = dma.done.wait [#allocation10], 384  }
 0x1ab   :  { %1103 = vsyncadd [#allocation10], 4294966912 }
 0x1ac   :  { %745 = vsyncpa [#allocation4], 1 }
 0x1ad   :  { %746 = vsyncpa [#allocation7], 1 }
 0x1ae   :  { %747 = vsyncpa [#allocation5], 1 }
 0x1af   :  { %748 = vsyncpa [#allocation10], 1 }

</bundles_post_ra>
